<compile_context>
chip_gen: v7x
topology: tpu7x:2x2x1
jax: 0.10.0
libtpu: 0.0.40
codegen_flags: <defaults>
</compile_context>

<pallas_src>
import functools

import jax
import jax.numpy as jnp
from jax.experimental import pallas as pl
from jax.experimental.pallas import tpu as pltpu

_SUBLANE = 8       # batch tiles kept a multiple of this (f32 sublane)
_MAX_TB = 256      # max batch-tile height (amortizes grid-step overhead)
_MIN_SPLIT = 64    # batches >= this always get >= 2 tiles (v7x has 2 TCs)

# Flipped to False (once) if this JAX build rejects pipeline_mode=pl.Buffered(1).
_SINGLE_BUFFER_OK = hasattr(pl, "Buffered")


def _round_up(x, m):
    return ((x + m - 1) // m) * m


def _batch_tiling(B):
    """Balanced batch tiling: (tile_height, num_tiles, padded_batch)."""
    b_sub = _round_up(B, _SUBLANE)
    nb = pl.cdiv(b_sub, _MAX_TB)          # enough tiles to cap tile height
    if b_sub >= _MIN_SPLIT:               # keep both v7x TensorCores busy
        nb = max(nb, 2)
    nb = max(nb, 1)
    tb = _round_up(pl.cdiv(b_sub, nb), _SUBLANE)   # balanced -> minimal padding
    nb = pl.cdiv(b_sub, tb)
    return tb, nb, tb * nb


def _actor_mlp_kernel(num_layers, *refs):
    """Fused MLP over one batch tile.

    refs = (x_ref, w0_ref, b0_ref, ..., w_{L-1}_ref, b_{L-1}_ref, out_ref)
    Weights are MXU-native (in, out); biases are (1, out).
    Hidden layers: ReLU(h @ W + b).  Last layer: tanh(h @ W + b).
    """
    x_ref = refs[0]
    out_ref = refs[-1]
    param_refs = refs[1:-1]

    h = x_ref[...]
    for li in range(num_layers):
        w = param_refs[2 * li][...]        # (in_i, out_i) — MXU-native
        b = param_refs[2 * li + 1][...]    # (1, out_i)
        z = jnp.dot(h, w, preferred_element_type=jnp.float32) + b
        if li < num_layers - 1:
            h = jnp.maximum(z, 0.0)        # ReLU on hidden layers
        else:
            h = jnp.tanh(z)                # tanh on output layer
    out_ref[...] = h.astype(out_ref.dtype)


def prepare_actor_params(weights, biases):
    """One-time parameter prep (do NOT call per forward).

    Transposes PyTorch-convention (out, in) weights to MXU-native (in, out)
    and reshapes biases to (1, out).  Reuse the result across forward calls.
    """
    params = []
    for w, b in zip(weights, biases):
        wt = jnp.asarray(w, jnp.float32).T            # (in, out)
        bt = jnp.asarray(b, jnp.float32).reshape(1, -1)
        params.append((wt, bt))
    return params


def _mlp_pallas_call(x, params, tb, nb, b_pad, out_size, *, single_buffer_weights):
    num_layers = len(params)
    in_size = x.shape[-1]

    resident_kwargs = {}
    if single_buffer_weights:
        # Weights/biases use constant index maps -> one VMEM buffer suffices.
        resident_kwargs = dict(pipeline_mode=pl.Buffered(1))

    operands = [x]
    in_specs = [pl.BlockSpec((tb, in_size), lambda i: (i, 0))]
    for w, b in params:
        operands += [w, b]
        in_specs += [
            pl.BlockSpec(w.shape, lambda i: (0, 0), **resident_kwargs),
            pl.BlockSpec(b.shape, lambda i: (0, 0), **resident_kwargs),
        ]

    return pl.pallas_call(
        functools.partial(_actor_mlp_kernel, num_layers),
        out_shape=jax.ShapeDtypeStruct((b_pad, out_size), jnp.float32),
        grid=(nb,),
        in_specs=in_specs,
        out_specs=pl.BlockSpec((tb, out_size), lambda i: (i, 0)),
        compiler_params=pltpu.CompilerParams(
            dimension_semantics=("parallel",),
        ),
    )(*operands)


def actor_forward(state, params):
    """ActorNN forward pass as one fused, batch-tiled Pallas kernel.

    state  : (B, input_size) or (input_size,) float32
    params : output of prepare_actor_params() — list of ((in,out) W, (1,out) b)
    """
    global _SINGLE_BUFFER_OK

    squeeze = state.ndim == 1
    if squeeze:
        state = state[None, :]
    state = state.astype(jnp.float32)

    B = state.shape[0]
    out_size = int(params[-1][0].shape[1])

    tb, nb, b_pad = _batch_tiling(B)

    # Pad only the batch dim (cheap; feature width stays natural -> no extra
    # HBM pass over an 8x-inflated input).
    x = state if b_pad == B else jnp.pad(state, ((0, b_pad - B), (0, 0)))

    if _SINGLE_BUFFER_OK:
        try:
            out_pad = _mlp_pallas_call(x, params, tb, nb, b_pad, out_size,
                                       single_buffer_weights=True)
        except Exception:
            _SINGLE_BUFFER_OK = False
            out_pad = _mlp_pallas_call(x, params, tb, nb, b_pad, out_size,
                                       single_buffer_weights=False)
    else:
        out_pad = _mlp_pallas_call(x, params, tb, nb, b_pad, out_size,
                                   single_buffer_weights=False)

    out = out_pad if b_pad == B else out_pad[:B]
    return out[0] if squeeze else out


def init_actor_params(key, input_size, output_size, hidden_layer_sizes):
    """Deterministic PyTorch-style init: U(-1/sqrt(fan_in), 1/sqrt(fan_in))."""
    sizes = [input_size] + (list(hidden_layer_sizes) if hidden_layer_sizes else []) + [output_size]
    weights, biases = [], []
    for i in range(len(sizes) - 1):
        fan_in, fan_out = sizes[i], sizes[i + 1]
        bound = 1.0 / jnp.sqrt(jnp.float32(fan_in))
        key, kw, kb = jax.random.split(key, 3)
        w = jax.random.uniform(kw, (fan_out, fan_in), jnp.float32, -bound, bound)
        b = jax.random.uniform(kb, (fan_out,), jnp.float32, -bound, bound)
        weights.append(w)
        biases.append(b)
    return weights, biases


def actor_forward_ref(state, weights, biases):
    """Pure-JAX reference for correctness checking (PyTorch convention params)."""
    squeeze = state.ndim == 1
    if squeeze:
        state = state[None, :]
    h = state
    for i, (w, b) in enumerate(zip(weights, biases)):
        z = h @ w.T + b
        h = jnp.maximum(z, 0.0) if i < len(weights) - 1 else jnp.tanh(z)
    return h[0] if squeeze else h


if __name__ == "__main__":
    key = jax.random.PRNGKey(0)

    # ActorNN(input_size=16, output_size=8, hidden_layer_sizes=[32, 32])
    input_size, output_size = 16, 8
    hidden_layer_sizes = [32, 32]
    batch = 4

    kp, kx = jax.random.split(key)
    weights, biases = init_actor_params(kp, input_size, output_size, hidden_layer_sizes)
    params = prepare_actor_params(weights, biases)   # one-time prep, reused below
    state = jax.random.normal(kx, (batch, input_size), jnp.float32)

    out = jax.block_until_ready(actor_forward(state, params))
    ref = actor_forward_ref(state, weights, biases)
    assert out.shape == (batch, output_size)
    assert jnp.allclose(out, ref, atol=1e-5, rtol=1e-5), "mismatch vs reference (multi-layer)"

    # Single-layer path (hidden_layer_sizes=None): tanh(Linear(state))
    w1, b1 = init_actor_params(jax.random.PRNGKey(1), input_size, output_size, None)
    p1 = prepare_actor_params(w1, b1)
    out1 = jax.block_until_ready(actor_forward(state, p1))
    ref1 = actor_forward_ref(state, w1, b1)
    assert jnp.allclose(out1, ref1, atol=1e-5, rtol=1e-5), "mismatch vs reference (single-layer)"

    # 1-D state path (no batch dim) — exercises squeeze handling.
    s1d = jax.random.normal(jax.random.PRNGKey(2), (input_size,), jnp.float32)
    out2 = jax.block_until_ready(actor_forward(s1d, params))
    ref2 = actor_forward_ref(s1d, weights, biases)
    assert out2.shape == (output_size,)
    assert jnp.allclose(out2, ref2, atol=1e-5, rtol=1e-5), "mismatch vs reference (1-D state)"

    # Larger, awkward batch (300) — exercises balanced batch tiling (2 tiles of
    # 152 rows, 4 padded rows) and the batch-parallel grid path.
    big_state = jax.random.normal(jax.random.PRNGKey(3), (300, input_size), jnp.float32)
    out3 = jax.block_until_ready(actor_forward(big_state, params))
    ref3 = actor_forward_ref(big_state, weights, biases)
    assert out3.shape == (300, output_size)
    assert jnp.allclose(out3, ref3, atol=1e-5, rtol=1e-5), "mismatch vs reference (batched)"

    print("KERNEL_OK")
</pallas_src>

<mosaic_0001>
module attributes {stable_mosaic.version = 11 : i64} {
  func.func @_actor_mlp_kernel(%arg0: i32, %arg1: memref<8x16xf32, #tpu.memory_space<vmem>>, %arg2: memref<16x32xf32, #tpu.memory_space<vmem>>, %arg3: memref<1x32xf32, #tpu.memory_space<vmem>>, %arg4: memref<32x32xf32, #tpu.memory_space<vmem>>, %arg5: memref<1x32xf32, #tpu.memory_space<vmem>>, %arg6: memref<32x8xf32, #tpu.memory_space<vmem>>, %arg7: memref<1x8xf32, #tpu.memory_space<vmem>>, %arg8: memref<8x8xf32, #tpu.memory_space<vmem>>) attributes {dimension_semantics = [#tpu.dimension_semantics<parallel>], iteration_bounds = array<i64: 1>, scalar_prefetch = 0 : i64, scratch_operands = 0 : i64, tpu.core_type = #tpu.core_type<tc>, window_params = [{transform_indices = @transform_0, window_bounds = array<i64: 8, 16>}, {pipeline_mode = #tpu.pipeline_mode<synchronous>, transform_indices = @transform_1, window_bounds = array<i64: 16, 32>}, {pipeline_mode = #tpu.pipeline_mode<synchronous>, transform_indices = @transform_2, window_bounds = array<i64: 1, 32>}, {pipeline_mode = #tpu.pipeline_mode<synchronous>, transform_indices = @transform_3, window_bounds = array<i64: 32, 32>}, {pipeline_mode = #tpu.pipeline_mode<synchronous>, transform_indices = @transform_4, window_bounds = array<i64: 1, 32>}, {pipeline_mode = #tpu.pipeline_mode<synchronous>, transform_indices = @transform_5, window_bounds = array<i64: 32, 8>}, {pipeline_mode = #tpu.pipeline_mode<synchronous>, transform_indices = @transform_6, window_bounds = array<i64: 1, 8>}, {transform_indices = @transform_7, window_bounds = array<i64: 8, 8>}]} {
    %c0 = arith.constant 0 : index
    %c0_0 = arith.constant 0 : index
    %0 = vector.load %arg1[%c0, %c0_0] : memref<8x16xf32, #tpu.memory_space<vmem>>, vector<8x16xf32>
    %c0_1 = arith.constant 0 : index
    %c0_2 = arith.constant 0 : index
    %1 = vector.load %arg2[%c0_1, %c0_2] : memref<16x32xf32, #tpu.memory_space<vmem>>, vector<16x32xf32>
    %c0_3 = arith.constant 0 : index
    %c0_4 = arith.constant 0 : index
    %2 = vector.load %arg3[%c0_3, %c0_4] : memref<1x32xf32, #tpu.memory_space<vmem>>, vector<1x32xf32>
    %cst = arith.constant dense<0.000000e+00> : vector<8x32xf32>
    %3 = tpu.matmul %0, %1, %cst {dimension_numbers = #tpu.dot_dimension_numbers<[1], [0], [0], [1], [0, 0, 1, 1], [], []>} : vector<8x16xf32>, vector<16x32xf32>, vector<8x32xf32> -> vector<8x32xf32>
    %4 = vector.broadcast %2 : vector<1x32xf32> to vector<8x32xf32>
    %5 = arith.addf %3, %4 : vector<8x32xf32>
    %cst_5 = arith.constant 0.000000e+00 : f32
    %6 = vector.broadcast %cst_5 : f32 to vector<8x32xf32>
    %7 = arith.maximumf %5, %6 : vector<8x32xf32>
    %c0_6 = arith.constant 0 : index
    %c0_7 = arith.constant 0 : index
    %8 = vector.load %arg4[%c0_6, %c0_7] : memref<32x32xf32, #tpu.memory_space<vmem>>, vector<32x32xf32>
    %c0_8 = arith.constant 0 : index
    %c0_9 = arith.constant 0 : index
    %9 = vector.load %arg5[%c0_8, %c0_9] : memref<1x32xf32, #tpu.memory_space<vmem>>, vector<1x32xf32>
    %cst_10 = arith.constant dense<0.000000e+00> : vector<8x32xf32>
    %10 = tpu.matmul %7, %8, %cst_10 {dimension_numbers = #tpu.dot_dimension_numbers<[1], [0], [0], [1], [0, 0, 1, 1], [], []>} : vector<8x32xf32>, vector<32x32xf32>, vector<8x32xf32> -> vector<8x32xf32>
    %11 = vector.broadcast %9 : vector<1x32xf32> to vector<8x32xf32>
    %12 = arith.addf %10, %11 : vector<8x32xf32>
    %cst_11 = arith.constant 0.000000e+00 : f32
    %13 = vector.broadcast %cst_11 : f32 to vector<8x32xf32>
    %14 = arith.maximumf %12, %13 : vector<8x32xf32>
    %c0_12 = arith.constant 0 : index
    %c0_13 = arith.constant 0 : index
    %15 = vector.load %arg6[%c0_12, %c0_13] : memref<32x8xf32, #tpu.memory_space<vmem>>, vector<32x8xf32>
    %c0_14 = arith.constant 0 : index
    %c0_15 = arith.constant 0 : index
    %16 = vector.load %arg7[%c0_14, %c0_15] : memref<1x8xf32, #tpu.memory_space<vmem>>, vector<1x8xf32>
    %cst_16 = arith.constant dense<0.000000e+00> : vector<8x8xf32>
    %17 = tpu.matmul %14, %15, %cst_16 {dimension_numbers = #tpu.dot_dimension_numbers<[1], [0], [0], [1], [0, 0, 1, 1], [], []>} : vector<8x32xf32>, vector<32x8xf32>, vector<8x8xf32> -> vector<8x8xf32>
    %18 = vector.broadcast %16 : vector<1x8xf32> to vector<8x8xf32>
    %19 = arith.addf %17, %18 : vector<8x8xf32>
    %20 = math.tanh %19 : vector<8x8xf32>
    %c0_17 = arith.constant 0 : index
    %c0_18 = arith.constant 0 : index
    %21 = vector.load %arg8[%c0_17, %c0_18] : memref<8x8xf32, #tpu.memory_space<vmem>>, vector<8x8xf32>
    tpu.vector_store %arg8[%c0_17, %c0_18], %20 {strides = array<i32>} : memref<8x8xf32, #tpu.memory_space<vmem>>, vector<8x8xf32>,
    return
  }
  func.func @transform_0(%arg0: i32) -> (i32, i32) {
    %c0_i32 = arith.constant 0 : i32
    %c0_i32_0 = arith.constant 0 : i32
    return %arg0, %c0_i32 : i32, i32
  }
  func.func @transform_1(%arg0: i32) -> (i32, i32) {
    %c0_i32 = arith.constant 0 : i32
    %c0_i32_0 = arith.constant 0 : i32
    %c0_i32_1 = arith.constant 0 : i32
    return %c0_i32, %c0_i32_0 : i32, i32
  }
  func.func @transform_2(%arg0: i32) -> (i32, i32) {
    %c0_i32 = arith.constant 0 : i32
    %c0_i32_0 = arith.constant 0 : i32
    %c0_i32_1 = arith.constant 0 : i32
    return %c0_i32, %c0_i32_0 : i32, i32
  }
  func.func @transform_3(%arg0: i32) -> (i32, i32) {
    %c0_i32 = arith.constant 0 : i32
    %c0_i32_0 = arith.constant 0 : i32
    %c0_i32_1 = arith.constant 0 : i32
    return %c0_i32, %c0_i32_0 : i32, i32
  }
  func.func @transform_4(%arg0: i32) -> (i32, i32) {
    %c0_i32 = arith.constant 0 : i32
    %c0_i32_0 = arith.constant 0 : i32
    %c0_i32_1 = arith.constant 0 : i32
    return %c0_i32, %c0_i32_0 : i32, i32
  }
  func.func @transform_5(%arg0: i32) -> (i32, i32) {
    %c0_i32 = arith.constant 0 : i32
    %c0_i32_0 = arith.constant 0 : i32
    %c0_i32_1 = arith.constant 0 : i32
    return %c0_i32, %c0_i32_0 : i32, i32
  }
  func.func @transform_6(%arg0: i32) -> (i32, i32) {
    %c0_i32 = arith.constant 0 : i32
    %c0_i32_0 = arith.constant 0 : i32
    %c0_i32_1 = arith.constant 0 : i32
    return %c0_i32, %c0_i32_0 : i32, i32
  }
  func.func @transform_7(%arg0: i32) -> (i32, i32) {
    %c0_i32 = arith.constant 0 : i32
    %c0_i32_0 = arith.constant 0 : i32
    return %arg0, %c0_i32 : i32, i32
  }
}

module attributes {stable_mosaic.version = 11 : i64} {
  func.func @_actor_mlp_kernel(%arg0: i32, %arg1: memref<8x16xf32, #tpu.memory_space<vmem>>, %arg2: memref<16x32xf32, #tpu.memory_space<vmem>>, %arg3: memref<1x32xf32, #tpu.memory_space<vmem>>, %arg4: memref<32x32xf32, #tpu.memory_space<vmem>>, %arg5: memref<1x32xf32, #tpu.memory_space<vmem>>, %arg6: memref<32x8xf32, #tpu.memory_space<vmem>>, %arg7: memref<1x8xf32, #tpu.memory_space<vmem>>, %arg8: memref<8x8xf32, #tpu.memory_space<vmem>>) attributes {dimension_semantics = [#tpu.dimension_semantics<parallel>], iteration_bounds = array<i64: 1>, scalar_prefetch = 0 : i64, scratch_operands = 0 : i64, tpu.core_type = #tpu.core_type<tc>, window_params = [{transform_indices = @transform_0, window_bounds = array<i64: 8, 16>}, {pipeline_mode = #tpu.pipeline_mode<synchronous>, transform_indices = @transform_1, window_bounds = array<i64: 16, 32>}, {pipeline_mode = #tpu.pipeline_mode<synchronous>, transform_indices = @transform_2, window_bounds = array<i64: 1, 32>}, {pipeline_mode = #tpu.pipeline_mode<synchronous>, transform_indices = @transform_3, window_bounds = array<i64: 32, 32>}, {pipeline_mode = #tpu.pipeline_mode<synchronous>, transform_indices = @transform_4, window_bounds = array<i64: 1, 32>}, {pipeline_mode = #tpu.pipeline_mode<synchronous>, transform_indices = @transform_5, window_bounds = array<i64: 32, 8>}, {pipeline_mode = #tpu.pipeline_mode<synchronous>, transform_indices = @transform_6, window_bounds = array<i64: 1, 8>}, {transform_indices = @transform_7, window_bounds = array<i64: 8, 8>}]} {
    %c0 = arith.constant 0 : index
    %c0_0 = arith.constant 0 : index
    %0 = vector.load %arg1[%c0, %c0_0] : memref<8x16xf32, #tpu.memory_space<vmem>>, vector<8x16xf32>
    %c0_1 = arith.constant 0 : index
    %c0_2 = arith.constant 0 : index
    %1 = vector.load %arg2[%c0_1, %c0_2] : memref<16x32xf32, #tpu.memory_space<vmem>>, vector<16x32xf32>
    %c0_3 = arith.constant 0 : index
    %c0_4 = arith.constant 0 : index
    %2 = vector.load %arg3[%c0_3, %c0_4] : memref<1x32xf32, #tpu.memory_space<vmem>>, vector<1x32xf32>
    %cst = arith.constant dense<0.000000e+00> : vector<8x32xf32>
    %3 = tpu.matmul %0, %1, %cst {dimension_numbers = #tpu.dot_dimension_numbers<[1], [0], [0], [1], [0, 0, 1, 1], [], []>} : vector<8x16xf32>, vector<16x32xf32>, vector<8x32xf32> -> vector<8x32xf32>
    %4 = vector.broadcast %2 : vector<1x32xf32> to vector<8x32xf32>
    %5 = arith.addf %3, %4 : vector<8x32xf32>
    %cst_5 = arith.constant 0.000000e+00 : f32
    %6 = vector.broadcast %cst_5 : f32 to vector<8x32xf32>
    %7 = arith.maximumf %5, %6 : vector<8x32xf32>
    %c0_6 = arith.constant 0 : index
    %c0_7 = arith.constant 0 : index
    %8 = vector.load %arg4[%c0_6, %c0_7] : memref<32x32xf32, #tpu.memory_space<vmem>>, vector<32x32xf32>
    %c0_8 = arith.constant 0 : index
    %c0_9 = arith.constant 0 : index
    %9 = vector.load %arg5[%c0_8, %c0_9] : memref<1x32xf32, #tpu.memory_space<vmem>>, vector<1x32xf32>
    %cst_10 = arith.constant dense<0.000000e+00> : vector<8x32xf32>
    %10 = tpu.matmul %7, %8, %cst_10 {dimension_numbers = #tpu.dot_dimension_numbers<[1], [0], [0], [1], [0, 0, 1, 1], [], []>} : vector<8x32xf32>, vector<32x32xf32>, vector<8x32xf32> -> vector<8x32xf32>
    %11 = vector.broadcast %9 : vector<1x32xf32> to vector<8x32xf32>
    %12 = arith.addf %10, %11 : vector<8x32xf32>
    %cst_11 = arith.constant 0.000000e+00 : f32
    %13 = vector.broadcast %cst_11 : f32 to vector<8x32xf32>
    %14 = arith.maximumf %12, %13 : vector<8x32xf32>
    %c0_12 = arith.constant 0 : index
    %c0_13 = arith.constant 0 : index
    %15 = vector.load %arg6[%c0_12, %c0_13] : memref<32x8xf32, #tpu.memory_space<vmem>>, vector<32x8xf32>
    %c0_14 = arith.constant 0 : index
    %c0_15 = arith.constant 0 : index
    %16 = vector.load %arg7[%c0_14, %c0_15] : memref<1x8xf32, #tpu.memory_space<vmem>>, vector<1x8xf32>
    %cst_16 = arith.constant dense<0.000000e+00> : vector<8x8xf32>
    %17 = tpu.matmul %14, %15, %cst_16 {dimension_numbers = #tpu.dot_dimension_numbers<[1], [0], [0], [1], [0, 0, 1, 1], [], []>} : vector<8x32xf32>, vector<32x8xf32>, vector<8x8xf32> -> vector<8x8xf32>
    %18 = vector.broadcast %16 : vector<1x8xf32> to vector<8x8xf32>
    %19 = arith.addf %17, %18 : vector<8x8xf32>
    %20 = math.tanh %19 : vector<8x8xf32>
    %c0_17 = arith.constant 0 : index
    %c0_18 = arith.constant 0 : index
    %21 = vector.load %arg8[%c0_17, %c0_18] : memref<8x8xf32, #tpu.memory_space<vmem>>, vector<8x8xf32>
    tpu.vector_store %arg8[%c0_17, %c0_18], %20 {strides = array<i32>} : memref<8x8xf32, #tpu.memory_space<vmem>>, vector<8x8xf32>,
    return
  }
  func.func @transform_0(%arg0: i32) -> (i32, i32) {
    %c0_i32 = arith.constant 0 : i32
    %c0_i32_0 = arith.constant 0 : i32
    return %arg0, %c0_i32 : i32, i32
  }
  func.func @transform_1(%arg0: i32) -> (i32, i32) {
    %c0_i32 = arith.constant 0 : i32
    %c0_i32_0 = arith.constant 0 : i32
    %c0_i32_1 = arith.constant 0 : i32
    return %c0_i32, %c0_i32_0 : i32, i32
  }
  func.func @transform_2(%arg0: i32) -> (i32, i32) {
    %c0_i32 = arith.constant 0 : i32
    %c0_i32_0 = arith.constant 0 : i32
    %c0_i32_1 = arith.constant 0 : i32
    return %c0_i32, %c0_i32_0 : i32, i32
  }
  func.func @transform_3(%arg0: i32) -> (i32, i32) {
    %c0_i32 = arith.constant 0 : i32
    %c0_i32_0 = arith.constant 0 : i32
    %c0_i32_1 = arith.constant 0 : i32
    return %c0_i32, %c0_i32_0 : i32, i32
  }
  func.func @transform_4(%arg0: i32) -> (i32, i32) {
    %c0_i32 = arith.constant 0 : i32
    %c0_i32_0 = arith.constant 0 : i32
    %c0_i32_1 = arith.constant 0 : i32
    return %c0_i32, %c0_i32_0 : i32, i32
  }
  func.func @transform_5(%arg0: i32) -> (i32, i32) {
    %c0_i32 = arith.constant 0 : i32
    %c0_i32_0 = arith.constant 0 : i32
    %c0_i32_1 = arith.constant 0 : i32
    return %c0_i32, %c0_i32_0 : i32, i32
  }
  func.func @transform_6(%arg0: i32) -> (i32, i32) {
    %c0_i32 = arith.constant 0 : i32
    %c0_i32_0 = arith.constant 0 : i32
    %c0_i32_1 = arith.constant 0 : i32
    return %c0_i32, %c0_i32_0 : i32, i32
  }
  func.func @transform_7(%arg0: i32) -> (i32, i32) {
    %c0_i32 = arith.constant 0 : i32
    %c0_i32_0 = arith.constant 0 : i32
    return %arg0, %c0_i32 : i32, i32
  }
}

</mosaic_0001>

<bundles_post_ra>
// kernel: tpu_custom_call.1
= control target key start
LH: loop header
LB: loop body
LE: loop exit
PB: predicated region body
PF: predicated region fallthrough
CT: control target
= control target key end

     0   :  { %12 = vsyncpa [#allocation3], 0  ;;  %s541_s0 = inlined_call_operand.hbm [shape: f32[8,16], index: 0, kind: input, shape index: {}]   ;;  %s542_s1 = inlined_call_operand.vmem [shape: f32[16,32], index: 1, kind: input, shape index: {}]   ;;  %s543_s2 = inlined_call_operand.vmem [shape: f32[1,32], index: 2, kind: input, shape index: {}]   ;;  %s544_s3 = inlined_call_operand.vmem [shape: f32[32,32], index: 3, kind: input, shape index: {}]   ;;  %s545_s4 = inlined_call_operand.vmem [shape: f32[1,32], index: 4, kind: input, shape index: {}]   ;;  %s546_s5 = inlined_call_operand.vmem [shape: f32[32,8], index: 5, kind: input, shape index: {}]   ;;  %s547_s6 = inlined_call_operand.vmem [shape: f32[1,8], index: 6, kind: input, shape index: {}]   ;;  %s548_s7 = inlined_call_operand.hbm [shape: f32[8,8], index: 7, kind: output, shape index: {}]  }
   0x1   :  { %13 = vsyncpa [#allocation4], 0  ;;  %s430_s24 = smov [#allocation2]   ;;  %s382_s28 = scalar_lea.hbm %s541_s0, 128 }
   0x2   :  { %s20_s25 = sshll.u32 %s430_s24, 4  ;;  %p383_p0 = scmp.ne.s32.totalorder %s541_s0, %s382_s28  ;;  %s21_s25 = int_to_ptr.vmem [resolvable:$true] %s20_s25 }
   0x3   :  { %p386_p1 = scmp.lt.u32.totalorder %s382_s28, %s541_s0 }
   0x5   :  { %p388_p2 = pnand %p386_p1, %p383_p0 }
   0x7   :  { %391 = shalt.err (!%p388_p2)
}
   0x8   :  { %s392_s10 = scalar_lea.vmem %s21_s25, 128  ;;  %p397_p4 = scmp.lt.s32.totalorder %s21_s25, %s21_s25 }
   0x9   :  { %p393_p3 = scmp.ne.s32.totalorder %s21_s25, %s392_s10  ;;  %p398_p5 = scmp.lt.s32.totalorder %s392_s10, %s392_s10 }
   0xb   :  { %p399_p6 = por %p398_p5, %p397_p4 }
   0xd   :  { %p400_p7 = pnand %p399_p6, %p393_p3 }
   0xf   :  { %403 = shalt.err (!%p400_p7)
}
  0x10   :  { %23 = dma.hbm_to_vmem [thread:$0]  %s541_s0, 128, %s21_s25, [#allocation3]  }
  0x11   :  { %426 = dma.done.wait [#allocation3], 128  }
  0x12   :  { %427 = vsyncadd [#allocation3], 4294967168  ;;  %v431_v0 = vmov 0.0|0.0   ;;  %vm432_vm0 = vmmov 0   ;;  %v433_v1 = vmov 0.0   ;;  %v40_v2 = vld [vmem:[%s542_s1] sm:$0xff] }
  0x13   :  { %360 = vmatprep.subr.bf16.mxu0 %v431_v0  ;;  %335 = vmatprep.mubr.msk.f32.mxu0 %vm432_vm0, %v433_v1  ;;  %v41_v3 = vld [vmem:[%s542_s1 + $0x8] sm:$0xff]  ;;  %v124_v5 = vld [vmem:[%s544_s3] sm:$0xff]  ;;  %vm49_vm1 = vcmask 130048   ;;  %v126_v9 = vld [vmem:[%s544_s3 + $0x10] sm:$0xff]  ;;  %vm135_vm2 = vcmask 261120   ;;  %vm295_vm3 = vcmask 64512  }
  0x14   :  { %363 = vmatprep.subr.bf16.mxu1 %v431_v0  ;;  %346 = vmatprep.mubr.msk.f32.mxu1 %vm432_vm0, %v433_v1  ;;  %v361_v4 = vpack.c.bf16 %v41_v3, %v40_v2  ;;  %v125_v6 = vld [vmem:[%s544_s3 + $0x8] sm:$0xff]  ;;  %v39_v8 = vld [vmem:[#allocation2] sm:$0xff]  ;;  %v127_v10 = vld [vmem:[%s544_s3 + $0x18] sm:$0xff] }
  0x15   :  { %v364_v7 = vpack.c.bf16 %v125_v6, %v124_v5  ;;  %v367_v11 = vpack.c.bf16 %v127_v10, %v126_v9  ;;  %v210_v12 = vld [vmem:[%s546_s5] sm:$0xff]  ;;  %v211_v13 = vld [vmem:[%s546_s5 + $0x8] sm:$0xff]  ;;  %v212_v20 = vld [vmem:[%s546_s5 + $0x10] sm:$0xff] }
  0x16   :  { %362 = vmatpush3.bf16.msra.mxu0 %v361_v4  ;;  %v370_v14 = vpack.c.bf16 %v211_v13, %v210_v12  ;;  %v312_v15 = vld [vmem:[%s543_s2] ss:$0 sm:$0xff]  ;;  %v213_v21 = vld [vmem:[%s546_s5 + $0x18] sm:$0xff]  ;;  %s434_s5 = smov [#allocation5]  }
  0x17   :  { %365 = vmatpush3.bf16.msra.mxu1 %v364_v7  ;;  %369 = vmatprep.subr.bf16.mxu0 %v431_v0  ;;  %v373_v22 = vpack.c.bf16 %v213_v21, %v212_v20  ;;  %v314_v23 = vld [vmem:[%s545_s4] ss:$0 sm:$0xff]  ;;  %s303_s12 = sshll.u32 %s434_s5, 4  ;;  %s304_s12 = int_to_ptr.vmem [resolvable:$true] %s303_s12 }
  0x18   :  { %366 = vmatprep.subr.bf16.mxu1 %v431_v0  ;;  %v316_v28 = vld [vmem:[%s547_s6] ss:$0 sm:$0xff]  ;;  %s404_s4 = scalar_lea.vmem %s304_s12, 128  ;;  %p409_p9 = scmp.lt.s32.totalorder %s304_s12, %s304_s12 }
  0x19   :  { %336 = vmatmul.mubr.msk.f32.vlgmr.msra.gmra.mrb[0].mxu0 %vm49_vm1, %v39_v8  ;;  %p405_p8 = scmp.ne.s32.totalorder %s304_s12, %s404_s4  ;;  %p410_p10 = scmp.lt.s32.totalorder %s404_s4, %s404_s4 }
  0x1a   :  { %357 = vmatprep.mubr.msk.f32.mxu0 %vm432_vm0, %v433_v1  ;;  %371 = vmatpush3.bf16.msra.mxu0 %v370_v14 }
  0x1b   :  { %368 = vmatpush3.bf16.msra.mxu1 %v367_v11  ;;  %372 = vmatprep.subr.bf16.mxu0 %v431_v0  ;;  %p411_p11 = por %p410_p10, %p409_p9 }
  0x1d   :  { %p412_p12 = pnand %p411_p11, %p405_p8 }
  0x1e   :  { %374 = vmatpush3.bf16.msra.mxu0 %v373_v22 }
  0xec   :  { %v119_v16 = vpop.f32.mrb[0].mxu0 }
  0xed   :  { %v120_v17 = vadd.f32 %v312_v15, %v119_v16  ;;  %v337_v18 = vpop.f32.mrb[1].mxu0 }
  0xef   :  { %v123_v19 = vmax.f32 %v120_v17, 0.0 }
  0xf1   :  { %347 = vmatmul.mubr.msk.f32.vlgmr.msra.gmra.mrb[0].mxu1 %vm135_vm2, %v123_v19 }
 0x1c4   :  { %v205_v24 = vpop.f32.mrb[0].mxu1 }
 0x1c5   :  { %v206_v25 = vadd.f32 %v314_v23, %v205_v24  ;;  %v348_v26 = vpop.f32.mrb[1].mxu1 }
 0x1c7   :  { %v209_v27 = vmax.f32 %v206_v25, 0.0 }
 0x1c9   :  { %358 = vmatmul.mubr.msk.f32.vlgmr.msra.gmra.mrb[2].mxu0 %vm135_vm2, %v209_v27 }
 0x29c   :  { %v290_v29 = vpop.f32.mrb[2].mxu0 }
 0x29d   :  { %v291_v30 = vadd.f32 %v316_v28, %v290_v29  ;;  %v359_v31 = vpop.f32.mrb[3].mxu0 }
 0x29f   :  { %380 = vtanh.f32 %v291_v30 }
 0x2a9   :  { %v381_v32 = vpop.eup %380 }
 0x2aa   :  { %296 = vst.msk [vmem:[#allocation5] sm:$0xff] %vm295_vm3, %v381_v32 }
 0x2ab   :  { %415 = shalt.err (!%p412_p12)
}
 0x2ac   :  { %s416_s6 = scalar_lea.hbm %s548_s7, 128 }
 0x2ad   :  { %p417_p13 = scmp.ne.s32.totalorder %s548_s7, %s416_s6  ;;  %p420_p0 = scmp.lt.u32.totalorder %s416_s6, %s548_s7 }
 0x2af   :  { %p422_p1 = pnand %p420_p0, %p417_p13 }
 0x2b1   :  { %425 = shalt.err (!%p422_p1)
}
 0x2b2   :  { %306 = dma.vmem_to_hbm [thread:$0]  %s304_s12, 128, %s548_s7, [#allocation4]  }
 0x2b3   :  { %428 = dma.done.wait [#allocation4], 128  }
 0x2b4   :  { %429 = vsyncadd [#allocation4], 4294967168 }
 0x2b5   :  { %310 = vsyncpa [#allocation3], 1 }
 0x2b6   :  { %311 = vsyncpa [#allocation4], 1 }

// kernel: tpu_custom_call.1
= control target key start
LH: loop header
LB: loop body
LE: loop exit
PB: predicated region body
PF: predicated region fallthrough
CT: control target
= control target key end

     0   :  { %12 = vsyncpa [#allocation3], 0  ;;  %s541_s0 = inlined_call_operand.hbm [shape: f32[8,16], index: 0, kind: input, shape index: {}]   ;;  %s542_s1 = inlined_call_operand.vmem [shape: f32[16,32], index: 1, kind: input, shape index: {}]   ;;  %s543_s2 = inlined_call_operand.vmem [shape: f32[1,32], index: 2, kind: input, shape index: {}]   ;;  %s544_s3 = inlined_call_operand.vmem [shape: f32[32,32], index: 3, kind: input, shape index: {}]   ;;  %s545_s4 = inlined_call_operand.vmem [shape: f32[1,32], index: 4, kind: input, shape index: {}]   ;;  %s546_s5 = inlined_call_operand.vmem [shape: f32[32,8], index: 5, kind: input, shape index: {}]   ;;  %s547_s6 = inlined_call_operand.vmem [shape: f32[1,8], index: 6, kind: input, shape index: {}]   ;;  %s548_s7 = inlined_call_operand.hbm [shape: f32[8,8], index: 7, kind: output, shape index: {}]  }
   0x1   :  { %13 = vsyncpa [#allocation4], 0  ;;  %s430_s24 = smov [#allocation2]   ;;  %s382_s28 = scalar_lea.hbm %s541_s0, 128 }
   0x2   :  { %s20_s25 = sshll.u32 %s430_s24, 4  ;;  %p383_p0 = scmp.ne.s32.totalorder %s541_s0, %s382_s28  ;;  %s21_s25 = int_to_ptr.vmem [resolvable:$true] %s20_s25 }
   0x3   :  { %p386_p1 = scmp.lt.u32.totalorder %s382_s28, %s541_s0 }
   0x5   :  { %p388_p2 = pnand %p386_p1, %p383_p0 }
   0x7   :  { %391 = shalt.err (!%p388_p2)
}
   0x8   :  { %s392_s10 = scalar_lea.vmem %s21_s25, 128  ;;  %p397_p4 = scmp.lt.s32.totalorder %s21_s25, %s21_s25 }
   0x9   :  { %p393_p3 = scmp.ne.s32.totalorder %s21_s25, %s392_s10  ;;  %p398_p5 = scmp.lt.s32.totalorder %s392_s10, %s392_s10 }
   0xb   :  { %p399_p6 = por %p398_p5, %p397_p4 }
   0xd   :  { %p400_p7 = pnand %p399_p6, %p393_p3 }
   0xf   :  { %403 = shalt.err (!%p400_p7)
}
  0x10   :  { %23 = dma.hbm_to_vmem [thread:$0]  %s541_s0, 128, %s21_s25, [#allocation3]  }
  0x11   :  { %426 = dma.done.wait [#allocation3], 128  }
  0x12   :  { %427 = vsyncadd [#allocation3], 4294967168  ;;  %v431_v0 = vmov 0.0|0.0   ;;  %vm432_vm0 = vmmov 0   ;;  %v433_v1 = vmov 0.0   ;;  %v40_v2 = vld [vmem:[%s542_s1] sm:$0xff] }
  0x13   :  { %360 = vmatprep.subr.bf16.mxu0 %v431_v0  ;;  %335 = vmatprep.mubr.msk.f32.mxu0 %vm432_vm0, %v433_v1  ;;  %v41_v3 = vld [vmem:[%s542_s1 + $0x8] sm:$0xff]  ;;  %v124_v5 = vld [vmem:[%s544_s3] sm:$0xff]  ;;  %vm49_vm1 = vcmask 130048   ;;  %v126_v9 = vld [vmem:[%s544_s3 + $0x10] sm:$0xff]  ;;  %vm135_vm2 = vcmask 261120   ;;  %vm295_vm3 = vcmask 64512  }
  0x14   :  { %363 = vmatprep.subr.bf16.mxu1 %v431_v0  ;;  %346 = vmatprep.mubr.msk.f32.mxu1 %vm432_vm0, %v433_v1  ;;  %v361_v4 = vpack.c.bf16 %v41_v3, %v40_v2  ;;  %v125_v6 = vld [vmem:[%s544_s3 + $0x8] sm:$0xff]  ;;  %v39_v8 = vld [vmem:[#allocation2] sm:$0xff]  ;;  %v127_v10 = vld [vmem:[%s544_s3 + $0x18] sm:$0xff] }
  0x15   :  { %v364_v7 = vpack.c.bf16 %v125_v6, %v124_v5  ;;  %v367_v11 = vpack.c.bf16 %v127_v10, %v126_v9  ;;  %v210_v12 = vld [vmem:[%s546_s5] sm:$0xff]  ;;  %v211_v13 = vld [vmem:[%s546_s5 + $0x8] sm:$0xff]  ;;  %v212_v20 = vld [vmem:[%s546_s5 + $0x10] sm:$0xff] }
  0x16   :  { %362 = vmatpush3.bf16.msra.mxu0 %v361_v4  ;;  %v370_v14 = vpack.c.bf16 %v211_v13, %v210_v12  ;;  %v312_v15 = vld [vmem:[%s543_s2] ss:$0 sm:$0xff]  ;;  %v213_v21 = vld [vmem:[%s546_s5 + $0x18] sm:$0xff]  ;;  %s434_s5 = smov [#allocation5]  }
  0x17   :  { %365 = vmatpush3.bf16.msra.mxu1 %v364_v7  ;;  %369 = vmatprep.subr.bf16.mxu0 %v431_v0  ;;  %v373_v22 = vpack.c.bf16 %v213_v21, %v212_v20  ;;  %v314_v23 = vld [vmem:[%s545_s4] ss:$0 sm:$0xff]  ;;  %s303_s12 = sshll.u32 %s434_s5, 4  ;;  %s304_s12 = int_to_ptr.vmem [resolvable:$true] %s303_s12 }
  0x18   :  { %366 = vmatprep.subr.bf16.mxu1 %v431_v0  ;;  %v316_v28 = vld [vmem:[%s547_s6] ss:$0 sm:$0xff]  ;;  %s404_s4 = scalar_lea.vmem %s304_s12, 128  ;;  %p409_p9 = scmp.lt.s32.totalorder %s304_s12, %s304_s12 }
  0x19   :  { %336 = vmatmul.mubr.msk.f32.vlgmr.msra.gmra.mrb[0].mxu0 %vm49_vm1, %v39_v8  ;;  %p405_p8 = scmp.ne.s32.totalorder %s304_s12, %s404_s4  ;;  %p410_p10 = scmp.lt.s32.totalorder %s404_s4, %s404_s4 }
  0x1a   :  { %357 = vmatprep.mubr.msk.f32.mxu0 %vm432_vm0, %v433_v1  ;;  %371 = vmatpush3.bf16.msra.mxu0 %v370_v14 }
  0x1b   :  { %368 = vmatpush3.bf16.msra.mxu1 %v367_v11  ;;  %372 = vmatprep.subr.bf16.mxu0 %v431_v0  ;;  %p411_p11 = por %p410_p10, %p409_p9 }
  0x1d   :  { %p412_p12 = pnand %p411_p11, %p405_p8 }
  0x1e   :  { %374 = vmatpush3.bf16.msra.mxu0 %v373_v22 }
  0xec   :  { %v119_v16 = vpop.f32.mrb[0].mxu0 }
  0xed   :  { %v120_v17 = vadd.f32 %v312_v15, %v119_v16  ;;  %v337_v18 = vpop.f32.mrb[1].mxu0 }
  0xef   :  { %v123_v19 = vmax.f32 %v120_v17, 0.0 }
  0xf1   :  { %347 = vmatmul.mubr.msk.f32.vlgmr.msra.gmra.mrb[0].mxu1 %vm135_vm2, %v123_v19 }
 0x1c4   :  { %v205_v24 = vpop.f32.mrb[0].mxu1 }
 0x1c5   :  { %v206_v25 = vadd.f32 %v314_v23, %v205_v24  ;;  %v348_v26 = vpop.f32.mrb[1].mxu1 }
 0x1c7   :  { %v209_v27 = vmax.f32 %v206_v25, 0.0 }
 0x1c9   :  { %358 = vmatmul.mubr.msk.f32.vlgmr.msra.gmra.mrb[2].mxu0 %vm135_vm2, %v209_v27 }
 0x29c   :  { %v290_v29 = vpop.f32.mrb[2].mxu0 }
 0x29d   :  { %v291_v30 = vadd.f32 %v316_v28, %v290_v29  ;;  %v359_v31 = vpop.f32.mrb[3].mxu0 }
 0x29f   :  { %380 = vtanh.f32 %v291_v30 }
 0x2a9   :  { %v381_v32 = vpop.eup %380 }
 0x2aa   :  { %296 = vst.msk [vmem:[#allocation5] sm:$0xff] %vm295_vm3, %v381_v32 }
 0x2ab   :  { %415 = shalt.err (!%p412_p12)
}
 0x2ac   :  { %s416_s6 = scalar_lea.hbm %s548_s7, 128 }
 0x2ad   :  { %p417_p13 = scmp.ne.s32.totalorder %s548_s7, %s416_s6  ;;  %p420_p0 = scmp.lt.u32.totalorder %s416_s6, %s548_s7 }
 0x2af   :  { %p422_p1 = pnand %p420_p0, %p417_p13 }
 0x2b1   :  { %425 = shalt.err (!%p422_p1)
}
 0x2b2   :  { %306 = dma.vmem_to_hbm [thread:$0]  %s304_s12, 128, %s548_s7, [#allocation4]  }
 0x2b3   :  { %428 = dma.done.wait [#allocation4], 128  }
 0x2b4   :  { %429 = vsyncadd [#allocation4], 4294967168 }
 0x2b5   :  { %310 = vsyncpa [#allocation3], 1 }
 0x2b6   :  { %311 = vsyncpa [#allocation4], 1 }

</bundles_post_ra>
